<compile_context>
chip_gen: v6e
topology: v6e:2x2x1
jax: 0.10.0
libtpu: 0.0.40
codegen_flags: <defaults>
</compile_context>

<pallas_src>
import jax
import jax.numpy as jnp
from jax.experimental import pallas as pl
from jax.experimental.pallas import tpu as pltpu

LANE = 128  # pad feature dims to a multiple of the 128-lane vreg / MXU width


def _round_up(x, m):
    return (x + m - 1) // m * m


def _make_mlp_kernel(n_layers):
    """Fused MLP: n_layers Linear layers with ReLU between them (none after last).

    refs = (x_ref, w1, b1, ..., wN, bN, o_ref).
    x / W are bf16 (MXU inputs), biases f32; accumulate, bias-add and ReLU in f32.
    """
    def kernel(*refs):
        x_ref, o_ref = refs[0], refs[-1]
        wb = refs[1:-1]
        h_lo = x_ref[...]                                   # bf16 activations
        h = None
        for li in range(n_layers):
            w = wb[2 * li][...]                             # bf16 (in_p, out_p)
            b = wb[2 * li + 1][...]                         # f32  (1, out_p)
            h = jnp.dot(h_lo, w, preferred_element_type=jnp.float32) + b
            if li < n_layers - 1:
                h = jnp.maximum(h, 0.0)                     # ReLU in f32 (VPU)
                h_lo = h.astype(jnp.bfloat16)               # downcast only at MXU input
        o_ref[...] = h.astype(o_ref.dtype)
    return kernel


def mlp_forward(x, params, *, tile_b=128):
    """x: (B, in_dim) f32.  params: list of (W (in, out) f32, b (1, out) f32)."""
    B, in_dim = x.shape
    n_layers = len(params)
    out_dim = params[-1][0].shape[1]

    # --- padded geometry -----------------------------------------------------
    in_p = _round_up(in_dim, LANE)
    out_ps = [_round_up(w.shape[1], LANE) for w, _ in params]
    out_p = out_ps[-1]
    B_p = _round_up(B, tile_b)

    # --- pad inputs / weights (zero padding keeps the math exact) -------------
    x_p = jnp.zeros((B_p, in_p), jnp.bfloat16)
    x_p = x_p.at[:B, :in_dim].set(x.astype(jnp.bfloat16))

    flat_args = [x_p]
    in_specs = [pl.BlockSpec((tile_b, in_p), lambda i: (i, 0))]
    prev_p = in_p
    for (w, b), op in zip(params, out_ps):
        w_p = jnp.zeros((prev_p, op), jnp.bfloat16)
        w_p = w_p.at[: w.shape[0], : w.shape[1]].set(w.astype(jnp.bfloat16))
        b_p = jnp.zeros((1, op), jnp.float32)
        b_p = b_p.at[:, : b.shape[1]].set(b)
        flat_args += [w_p, b_p]
        # constant index maps -> weights/biases stay resident in VMEM
        in_specs.append(pl.BlockSpec((prev_p, op), lambda i: (0, 0)))
        in_specs.append(pl.BlockSpec((1, op), lambda i: (0, 0)))
        prev_p = op

    out_specs = pl.BlockSpec((tile_b, out_p), lambda i: (i, 0))
    grid = (B_p // tile_b,)

    # --- cost estimate ---------------------------------------------------------
    dims_p = [in_p] + out_ps
    flops = 2 * B_p * sum(dims_p[i] * dims_p[i + 1] for i in range(n_layers))
    bytes_accessed = sum(int(a.size) * a.dtype.itemsize for a in flat_args) \
        + B_p * out_p * 4
    cost = pl.CostEstimate(flops=flops, transcendentals=0,
                           bytes_accessed=bytes_accessed)

    # --- VMEM budget: resident weights + double-buffered I/O tiles + live acts --
    resident = sum(int(a.size) * a.dtype.itemsize for a in flat_args[1:])
    est_vmem = (resident
                + 2 * tile_b * in_p * 2          # double-buffered x tile (bf16)
                + 2 * tile_b * out_p * 4         # double-buffered out tile (f32)
                + 3 * tile_b * max(dims_p) * 4)  # live f32 intermediates (slack)
    cp_kwargs = dict(dimension_semantics=("parallel",))
    if est_vmem > 30 * 1024 * 1024:
        cp_kwargs["vmem_limit_bytes"] = int(est_vmem * 1.5)

    out_p_arr = pl.pallas_call(
        _make_mlp_kernel(n_layers),
        out_shape=jax.ShapeDtypeStruct((B_p, out_p), jnp.float32),
        grid=grid,
        in_specs=in_specs,
        out_specs=out_specs,
        compiler_params=pltpu.CompilerParams(**cp_kwargs),
        cost_estimate=cost,
    )(*flat_args)

    return out_p_arr[:B, :out_dim]


def init_params(key, in_dim, out_dim, layers):
    """Deterministic init mimicking nn.Linear's U(-1/sqrt(fan_in), 1/sqrt(fan_in)).
    Weights stored pre-transposed as (in, out) so h = x @ W + b == PyTorch x @ W.T + b."""
    dims = [in_dim] + list(layers) + [out_dim]
    params = []
    for i in range(len(dims) - 1):
        fan_in, fan_out = dims[i], dims[i + 1]
        key, kw, kb = jax.random.split(key, 3)
        bound = 1.0 / jnp.sqrt(fan_in)
        w = jax.random.uniform(kw, (fan_in, fan_out), jnp.float32, -bound, bound)
        b = jax.random.uniform(kb, (1, fan_out), jnp.float32, -bound, bound)
        params.append((w, b))
    return params


def mlp_reference_f32(x, params):
    h = x
    for i, (w, b) in enumerate(params):
        h = h @ w + b
        if i < len(params) - 1:
            h = jnp.maximum(h, 0.0)
    return h


def mlp_reference_bf16(x, params):
    """Emulates the kernel's numerics: bf16 MXU inputs, f32 accumulation."""
    h_lo = x.astype(jnp.bfloat16)
    h = None
    for i, (w, b) in enumerate(params):
        h = jnp.dot(h_lo, w.astype(jnp.bfloat16),
                    preferred_element_type=jnp.float32) + b
        if i < len(params) - 1:
            h = jnp.maximum(h, 0.0)
            h_lo = h.astype(jnp.bfloat16)
    return h


if __name__ == "__main__":
    key = jax.random.PRNGKey(0)
    B, in_dim, out_dim = 256, 32, 16
    layers = [64, 64, 64]   # small analogue of the default [512, 512, 512]

    kx, kp = jax.random.split(key)
    x = jax.random.normal(kx, (B, in_dim), jnp.float32)
    params = init_params(kp, in_dim, out_dim, layers)

    out = jax.block_until_ready(mlp_forward(x, params, tile_b=128))
    assert out.shape == (B, out_dim)

    # Tight check vs. a reference that uses the same bf16-input / f32-accumulate math.
    ref_lo = mlp_reference_bf16(x, params)
    assert jnp.allclose(out, ref_lo, atol=2e-3, rtol=2e-3), \
        float(jnp.max(jnp.abs(out - ref_lo)))

    # Loose check vs. the full-f32 PyTorch-equivalent reference.
    ref_hi = mlp_reference_f32(x, params)
    assert jnp.allclose(out, ref_hi, atol=5e-2, rtol=5e-2), \
        float(jnp.max(jnp.abs(out - ref_hi)))

    print("KERNEL_OK")
</pallas_src>

<mosaic_0001>
module attributes {stable_mosaic.version = 11 : i64} {
  func.func @kernel(%arg0: i32, %arg1: memref<128x128xbf16, #tpu.memory_space<vmem>>, %arg2: memref<128x128xbf16, #tpu.memory_space<vmem>>, %arg3: memref<1x128xf32, #tpu.memory_space<vmem>>, %arg4: memref<128x128xbf16, #tpu.memory_space<vmem>>, %arg5: memref<1x128xf32, #tpu.memory_space<vmem>>, %arg6: memref<128x128xbf16, #tpu.memory_space<vmem>>, %arg7: memref<1x128xf32, #tpu.memory_space<vmem>>, %arg8: memref<128x128xbf16, #tpu.memory_space<vmem>>, %arg9: memref<1x128xf32, #tpu.memory_space<vmem>>, %arg10: memref<128x128xf32, #tpu.memory_space<vmem>>) attributes {dimension_semantics = [#tpu.dimension_semantics<parallel>], iteration_bounds = array<i64: 2>, scalar_prefetch = 0 : i64, scratch_operands = 0 : i64, tpu.core_type = #tpu.core_type<tc>, window_params = [{transform_indices = @transform_0, window_bounds = array<i64: 128, 128>}, {pipeline_mode = #tpu.pipeline_mode<synchronous>, transform_indices = @transform_1, window_bounds = array<i64: 128, 128>}, {pipeline_mode = #tpu.pipeline_mode<synchronous>, transform_indices = @transform_2, window_bounds = array<i64: 1, 128>}, {pipeline_mode = #tpu.pipeline_mode<synchronous>, transform_indices = @transform_3, window_bounds = array<i64: 128, 128>}, {pipeline_mode = #tpu.pipeline_mode<synchronous>, transform_indices = @transform_4, window_bounds = array<i64: 1, 128>}, {pipeline_mode = #tpu.pipeline_mode<synchronous>, transform_indices = @transform_5, window_bounds = array<i64: 128, 128>}, {pipeline_mode = #tpu.pipeline_mode<synchronous>, transform_indices = @transform_6, window_bounds = array<i64: 1, 128>}, {pipeline_mode = #tpu.pipeline_mode<synchronous>, transform_indices = @transform_7, window_bounds = array<i64: 128, 128>}, {pipeline_mode = #tpu.pipeline_mode<synchronous>, transform_indices = @transform_8, window_bounds = array<i64: 1, 128>}, {transform_indices = @transform_9, window_bounds = array<i64: 128, 128>}]} {
    %c0 = arith.constant 0 : index
    %c0_0 = arith.constant 0 : index
    %0 = vector.load %arg1[%c0, %c0_0] : memref<128x128xbf16, #tpu.memory_space<vmem>>, vector<128x128xbf16>
    %c0_1 = arith.constant 0 : index
    %c0_2 = arith.constant 0 : index
    %1 = vector.load %arg2[%c0_1, %c0_2] : memref<128x128xbf16, #tpu.memory_space<vmem>>, vector<128x128xbf16>
    %c0_3 = arith.constant 0 : index
    %c0_4 = arith.constant 0 : index
    %2 = vector.load %arg3[%c0_3, %c0_4] : memref<1x128xf32, #tpu.memory_space<vmem>>, vector<1x128xf32>
    %cst = arith.constant dense<0.000000e+00> : vector<128x128xf32>
    %3 = tpu.matmul %0, %1, %cst {dimension_numbers = #tpu.dot_dimension_numbers<[1], [0], [0], [1], [0, 0, 1, 1], [], []>} : vector<128x128xbf16>, vector<128x128xbf16>, vector<128x128xf32> -> vector<128x128xf32>
    %4 = vector.broadcast %2 : vector<1x128xf32> to vector<128x128xf32>
    %5 = arith.addf %3, %4 : vector<128x128xf32>
    %cst_5 = arith.constant 0.000000e+00 : f32
    %6 = vector.broadcast %cst_5 : f32 to vector<128x128xf32>
    %7 = arith.maximumf %5, %6 : vector<128x128xf32>
    %8 = arith.truncf %7 : vector<128x128xf32> to vector<128x128xbf16>
    %c0_6 = arith.constant 0 : index
    %c0_7 = arith.constant 0 : index
    %9 = vector.load %arg4[%c0_6, %c0_7] : memref<128x128xbf16, #tpu.memory_space<vmem>>, vector<128x128xbf16>
    %c0_8 = arith.constant 0 : index
    %c0_9 = arith.constant 0 : index
    %10 = vector.load %arg5[%c0_8, %c0_9] : memref<1x128xf32, #tpu.memory_space<vmem>>, vector<1x128xf32>
    %cst_10 = arith.constant dense<0.000000e+00> : vector<128x128xf32>
    %11 = tpu.matmul %8, %9, %cst_10 {dimension_numbers = #tpu.dot_dimension_numbers<[1], [0], [0], [1], [0, 0, 1, 1], [], []>} : vector<128x128xbf16>, vector<128x128xbf16>, vector<128x128xf32> -> vector<128x128xf32>
    %12 = vector.broadcast %10 : vector<1x128xf32> to vector<128x128xf32>
    %13 = arith.addf %11, %12 : vector<128x128xf32>
    %cst_11 = arith.constant 0.000000e+00 : f32
    %14 = vector.broadcast %cst_11 : f32 to vector<128x128xf32>
    %15 = arith.maximumf %13, %14 : vector<128x128xf32>
    %16 = arith.truncf %15 : vector<128x128xf32> to vector<128x128xbf16>
    %c0_12 = arith.constant 0 : index
    %c0_13 = arith.constant 0 : index
    %17 = vector.load %arg6[%c0_12, %c0_13] : memref<128x128xbf16, #tpu.memory_space<vmem>>, vector<128x128xbf16>
    %c0_14 = arith.constant 0 : index
    %c0_15 = arith.constant 0 : index
    %18 = vector.load %arg7[%c0_14, %c0_15] : memref<1x128xf32, #tpu.memory_space<vmem>>, vector<1x128xf32>
    %cst_16 = arith.constant dense<0.000000e+00> : vector<128x128xf32>
    %19 = tpu.matmul %16, %17, %cst_16 {dimension_numbers = #tpu.dot_dimension_numbers<[1], [0], [0], [1], [0, 0, 1, 1], [], []>} : vector<128x128xbf16>, vector<128x128xbf16>, vector<128x128xf32> -> vector<128x128xf32>
    %20 = vector.broadcast %18 : vector<1x128xf32> to vector<128x128xf32>
    %21 = arith.addf %19, %20 : vector<128x128xf32>
    %cst_17 = arith.constant 0.000000e+00 : f32
    %22 = vector.broadcast %cst_17 : f32 to vector<128x128xf32>
    %23 = arith.maximumf %21, %22 : vector<128x128xf32>
    %24 = arith.truncf %23 : vector<128x128xf32> to vector<128x128xbf16>
    %c0_18 = arith.constant 0 : index
    %c0_19 = arith.constant 0 : index
    %25 = vector.load %arg8[%c0_18, %c0_19] : memref<128x128xbf16, #tpu.memory_space<vmem>>, vector<128x128xbf16>
    %c0_20 = arith.constant 0 : index
    %c0_21 = arith.constant 0 : index
    %26 = vector.load %arg9[%c0_20, %c0_21] : memref<1x128xf32, #tpu.memory_space<vmem>>, vector<1x128xf32>
    %cst_22 = arith.constant dense<0.000000e+00> : vector<128x128xf32>
    %27 = tpu.matmul %24, %25, %cst_22 {dimension_numbers = #tpu.dot_dimension_numbers<[1], [0], [0], [1], [0, 0, 1, 1], [], []>} : vector<128x128xbf16>, vector<128x128xbf16>, vector<128x128xf32> -> vector<128x128xf32>
    %28 = vector.broadcast %26 : vector<1x128xf32> to vector<128x128xf32>
    %29 = arith.addf %27, %28 : vector<128x128xf32>
    %c0_23 = arith.constant 0 : index
    %c0_24 = arith.constant 0 : index
    %30 = vector.load %arg10[%c0_23, %c0_24] : memref<128x128xf32, #tpu.memory_space<vmem>>, vector<128x128xf32>
    tpu.vector_store %arg10[%c0_23, %c0_24], %29 {strides = array<i32>} : memref<128x128xf32, #tpu.memory_space<vmem>>, vector<128x128xf32>,
    return
  }
  func.func @transform_0(%arg0: i32) -> (i32, i32) {
    %c0_i32 = arith.constant 0 : i32
    %c0_i32_0 = arith.constant 0 : i32
    return %arg0, %c0_i32 : i32, i32
  }
  func.func @transform_1(%arg0: i32) -> (i32, i32) {
    %c0_i32 = arith.constant 0 : i32
    %c0_i32_0 = arith.constant 0 : i32
    %c0_i32_1 = arith.constant 0 : i32
    return %c0_i32, %c0_i32_0 : i32, i32
  }
  func.func @transform_2(%arg0: i32) -> (i32, i32) {
    %c0_i32 = arith.constant 0 : i32
    %c0_i32_0 = arith.constant 0 : i32
    %c0_i32_1 = arith.constant 0 : i32
    return %c0_i32, %c0_i32_0 : i32, i32
  }
  func.func @transform_3(%arg0: i32) -> (i32, i32) {
    %c0_i32 = arith.constant 0 : i32
    %c0_i32_0 = arith.constant 0 : i32
    %c0_i32_1 = arith.constant 0 : i32
    return %c0_i32, %c0_i32_0 : i32, i32
  }
  func.func @transform_4(%arg0: i32) -> (i32, i32) {
    %c0_i32 = arith.constant 0 : i32
    %c0_i32_0 = arith.constant 0 : i32
    %c0_i32_1 = arith.constant 0 : i32
    return %c0_i32, %c0_i32_0 : i32, i32
  }
  func.func @transform_5(%arg0: i32) -> (i32, i32) {
    %c0_i32 = arith.constant 0 : i32
    %c0_i32_0 = arith.constant 0 : i32
    %c0_i32_1 = arith.constant 0 : i32
    return %c0_i32, %c0_i32_0 : i32, i32
  }
  func.func @transform_6(%arg0: i32) -> (i32, i32) {
    %c0_i32 = arith.constant 0 : i32
    %c0_i32_0 = arith.constant 0 : i32
    %c0_i32_1 = arith.constant 0 : i32
    return %c0_i32, %c0_i32_0 : i32, i32
  }
  func.func @transform_7(%arg0: i32) -> (i32, i32) {
    %c0_i32 = arith.constant 0 : i32
    %c0_i32_0 = arith.constant 0 : i32
    %c0_i32_1 = arith.constant 0 : i32
    return %c0_i32, %c0_i32_0 : i32, i32
  }
  func.func @transform_8(%arg0: i32) -> (i32, i32) {
    %c0_i32 = arith.constant 0 : i32
    %c0_i32_0 = arith.constant 0 : i32
    %c0_i32_1 = arith.constant 0 : i32
    return %c0_i32, %c0_i32_0 : i32, i32
  }
  func.func @transform_9(%arg0: i32) -> (i32, i32) {
    %c0_i32 = arith.constant 0 : i32
    %c0_i32_0 = arith.constant 0 : i32
    return %arg0, %c0_i32 : i32, i32
  }
}

</mosaic_0001>

<bundles_post_ra>
// kernel: tpu_custom_call.1
= control target key start
LH: loop header
LB: loop body
LE: loop exit
PB: predicated region body
PF: predicated region fallthrough
CT: control target
= control target key end

     0   :  { %s2283_s0 = inlined_call_operand.hbm [shape: bf16[256,128], index: 0, kind: input, shape index: {}]   ;;  %s2284_s1 = inlined_call_operand.hbm [shape: bf16[128,128], index: 1, kind: input, shape index: {}]   ;;  %s2285_s2 = inlined_call_operand.vmem [shape: f32[1,128], index: 2, kind: input, shape index: {}]   ;;  %s2286_s3 = inlined_call_operand.hbm [shape: bf16[128,128], index: 3, kind: input, shape index: {}]   ;;  %s2287_s4 = inlined_call_operand.vmem [shape: f32[1,128], index: 4, kind: input, shape index: {}]   ;;  %s2288_s5 = inlined_call_operand.hbm [shape: bf16[128,128], index: 5, kind: input, shape index: {}]   ;;  %s2289_s6 = inlined_call_operand.vmem [shape: f32[1,128], index: 6, kind: input, shape index: {}]   ;;  %s2290_s7 = inlined_call_operand.hbm [shape: bf16[128,128], index: 7, kind: input, shape index: {}]   ;;  %s2291_s8 = inlined_call_operand.vmem [shape: f32[1,128], index: 8, kind: input, shape index: {}]   ;;  %s2292_s9 = inlined_call_operand.hbm [shape: f32[256,128], index: 9, kind: output, shape index: {}]  }
   0x1   :  { %2299 = sst [smem:[#allocation16_spill]] %s2284_s1 }
   0x2   :  { %2300 = sst [smem:[#allocation17_spill]] %s2286_s3 }
   0x3   :  { %2301 = sst [smem:[#allocation18_spill]] %s2288_s5 }
   0x4   :  { %14 = vsyncpa [#allocation3], 0 }
   0x5   :  { %16 = vsyncpa [#allocation3 + $0x1], 0 }
   0x6   :  { %17 = vsyncpa [#allocation6], 0 }
   0x7   :  { %18 = vsyncpa [#allocation9], 0 }
   0x8   :  { %19 = vsyncpa [#allocation4], 0 }
   0x9   :  { %21 = vsyncpa [#allocation4 + $0x1], 0  ;;  %s2018_s30 = smov 0   ;;  %s2020_s10 = smov 0  }
   0xa   :  { %s2022_s11 = smov 0   ;;  %s2024_s12 = smov 0  }
   0xb LB: > { %s2039_s13 = sadd.s32 4294967295, %s1956_s12   ;;  %s1361_s14 = sadd.s32 4294967294, %s1956_s12   ;;  %s1956_s12 = sphi %s2024_s12, %s2325_s12   ;;  %s1952_s11 = sphi %s2022_s11, %s2324_s11   ;;  %s1948_s10 = sphi %s2020_s10, %s2323_s10   ;;  %s1944_s30 = sphi %s2018_s30, %s2322_s30  }
   0xc   : > { %p47_p0 = scmp.ne.s32.totalorder %s1948_s10, %s1944_s30  ;;  %p2293_p1 = scmp.eq.s32.totalorder %s2039_s13, 0 }
   0xd   : > { %p239_p2 = scmp.eq.s32.totalorder %s2039_s13, 1  ;;  %p245_p3 = scmp.eq.s32.totalorder %s1361_s14, 1 }
   0xe   : > { %p2048_p4 = por %p2293_p1, %p47_p0  ;;  %p1362_p5 = scmp.ge.s32.totalorder %s1956_s12, 1 }
   0xf   : > { %p2053_p6 = por %p245_p3, %p47_p0  ;;  %p252_p7 = scmp.lt.s32.totalorder %s1956_s12, 3 }
  0x10   : > { %s2302_s15 = scalar_select %p2048_p4, 1, 0 }
  0x11   : > { %s2303_s16 = scalar_select %p2053_p6, 1, 0 }
  0x12   : > { %p2058_p8 = pnand %p1362_p5, %p252_p7  ;;  %s1958_s18 = smov [#allocation5]  }
  0x13   : > { %s264_s19 = sshll.u32 %s1958_s18, 4  ;;  %s1959_s21 = smov [#allocation8]   ;;  %s265_s19 = int_to_ptr.vmem [resolvable:$true] %s264_s19 }
  0x14   : > { %s2304_s17 = scalar_select %p2058_p8, 1, 0 }
  0x15   : > { %p1641_p9 = pneg %p2058_p8  ;;  %s296_s22 = sshll.u32 %s1959_s21, 4  ;;  %s297_s22 = int_to_ptr.vmem [resolvable:$true] %s296_s22 }
  0x16   : > { %s1960_s23 = smov [#allocation7]   ;;  %s1763_s25 = scalar_lea.vmem %s265_s19, 1024 }
  0x17   : > { %p2067_p11 = pnand %p1641_p9, %p2293_p1  ;;  %s280_s24 = sshll.u32 %s1960_s23, 4  ;;  %s281_s24 = int_to_ptr.vmem [resolvable:$true] %s280_s24 }
  0x18   : > { %p1764_p13 = scmp.ne.s32.totalorder %s265_s19, %s1763_s25  ;;  %p1771_p5 = scmp.lt.s32.totalorder %s265_s19, %s265_s19 }
  0x19   : > { %p1754_p12 = pneg %p2067_p11  ;;  %p1772_p7 = scmp.lt.s32.totalorder %s1763_s25, %s1763_s25 }
  0x1b   : > { %p1766_p0 = pnand %p1764_p13, %p1754_p12  ;;  %p1773_p9 = por %p1772_p7, %p1771_p5 }
  0x1d   : > { %p1767_p3 = pneg %p1766_p0 }
  0x1f   : > { %p1774_p10 = pnand %p1773_p9, %p1767_p3 }
  0x21   : > { %1777 = shalt.err (!%p1774_p10)
}
  0x22   : > { %s2294_s26 = smov 64   ;;  %s2295_s27 = smov 4  }
  0x23   : > { %s2306_s1 = sld [smem:[#allocation16_spill]]  ;;  %s1789_s14 = scalar_lea.vmem %s297_s22, 1024 }
  0x24   : > { %p1790_p13 = scmp.ne.s32.totalorder %s297_s22, %s1789_s14  ;;  %p1797_p3 = scmp.lt.s32.totalorder %s297_s22, %s297_s22 }
  0x25   : > { %p1798_p10 = scmp.lt.s32.totalorder %s1789_s14, %s1789_s14 }
  0x26   : > { %p1792_p0 = pnand %p1790_p13, %p1754_p12 }
  0x27   : > { %p1799_p7 = por %p1798_p10, %p1797_p3 }
  0x28   : > { %p1793_p5 = pneg %p1792_p0 }
  0x29   : > { %1644 = dma.hbm_to_vmem [thread:$0]  (!%p2067_p11), %s2306_s1, 1024, %s265_s19, [#allocation6], %s2294_s26, %s2294_s26, %s2295_s27  }
  0x2a   : > { %p1800_p9 = pnand %p1799_p7, %p1793_p5 }
  0x2c   : > { %1803 = shalt.err (!%p1800_p9)
}
  0x2d   : > { %s2307_s5 = sld [smem:[#allocation18_spill]]  ;;  %s1815_s19 = scalar_lea.vmem %s281_s24, 1024 }
  0x2e   : > { %p1816_p1 = scmp.ne.s32.totalorder %s281_s24, %s1815_s19  ;;  %p1823_p3 = scmp.lt.s32.totalorder %s281_s24, %s281_s24 }
  0x2f   : > { %p1824_p5 = scmp.lt.s32.totalorder %s1815_s19, %s1815_s19 }
  0x30   : > { %p1818_p13 = pnand %p1816_p1, %p1754_p12 }
  0x31   : > { %p1825_p10 = por %p1824_p5, %p1823_p3 }
  0x32   : > { %p1819_p0 = pneg %p1818_p13 }
  0x33   : > { %1650 = dma.hbm_to_vmem [thread:$0]  (!%p2067_p11), %s2307_s5, 1024, %s297_s22, [#allocation9], %s2294_s26, %s2294_s26, %s2295_s27  }
  0x34   : > { %p1826_p7 = pnand %p1825_p10, %p1819_p0 }
  0x36   : > { %1829 = shalt.err (!%p1826_p7)
}
  0x37   : > { %s2308_s3 = sld [smem:[#allocation17_spill]]  ;;  %s1963_s22 = smov [#allocation10]  }
  0x38   : > { %s312_s28 = sshll.u32 %s1963_s22, 4  ;;  %s313_s28 = int_to_ptr.vmem [resolvable:$true] %s312_s28 }
  0x39   : > { %s1841_s29 = scalar_lea.vmem %s313_s28, 1024  ;;  %p1849_p0 = scmp.lt.s32.totalorder %s313_s28, %s313_s28 }
  0x3a   : > { %p1842_p1 = scmp.ne.s32.totalorder %s313_s28, %s1841_s29  ;;  %p1850_p3 = scmp.lt.s32.totalorder %s1841_s29, %s1841_s29 }
  0x3c   : > { %p1844_p9 = pnand %p1842_p1, %p1754_p12  ;;  %p1851_p5 = por %p1850_p3, %p1849_p0 }
  0x3d   : > { %1647 = dma.hbm_to_vmem [thread:$0]  (!%p2067_p11), %s2308_s3, 1024, %s281_s24, [#allocation6], %s2294_s26, %s2294_s26, %s2295_s27  }
  0x3e   : > { %p1845_p13 = pneg %p1844_p9 }
  0x40   : > { %p1852_p10 = pnand %p1851_p5, %p1845_p13 }
  0x42   : > { %1855 = shalt.err (!%p1852_p10)
}
  0x43   : > { %1653 = dma.hbm_to_vmem [thread:$0]  (!%p2067_p11), %s2290_s7, 1024, %s313_s28, [#allocation9], %s2294_s26, %s2294_s26, %s2295_s27  }
  0x44   : > { %s2118_s18 = sadd.s32 1, %s1956_s12   ;;  %s34_s20 = sadd.s32 1, %s1952_s11 }
  0x45   : > { %s31_s21 = ssub.s32 %s1956_s12, %s2118_s18  ;;  %p41_p12 = scmp.ne.s32.totalorder %s1952_s11, %s1948_s10 }
  0x46   : > { %p32_p7 = scmp.eq.s32.totalorder %s31_s21, 0  ;;  %p42_p1 = scmp.eq.s32.totalorder %s1956_s12, 0 }
  0x47   : > { %p2128_p9 = por %p239_p2, %p41_p12  ;;  %p1666_p13 = scmp.lt.s32.totalorder %s1956_s12, 2 }
  0x48   : > { %s2134_s23 = scalar_select %p32_p7, %s1952_s11, %s34_s20  }
  0x49   : > { %s2309_s19 = scalar_select %p2128_p9, 1, 0 }
  0x4a   : > { %p43_p0 = por %p42_p1, %p41_p12  ;;  %s329_s25 = sand.u32 1, %s1952_s11  }
  0x4b   : > { %s1368_s22 = sshll.u32 %s329_s25, 6  ;;  %s1427_s28 = sshll.u32 %s1956_s12, 10 }
  0x4c   : > { %s2141_s14 = scalar_lea.hbm %s2283_s0, %s1427_s28  ;;  %s333_s21 = scalar_lea.vmem [#allocation2], %s1368_s22 }
  0x4d   : > { %s340_s26 = sshll.u32 %s333_s21, 4  ;;  %p2145_p2 = pnand %p1666_p13, %p43_p0  ;;  %s2143_s26 = int_to_ptr.vmem [resolvable:$true] %s340_s26 }
  0x4e   : > { %s2149_s20 = scalar_lea.sflag [#allocation3], %s329_s25  ;;  %s1856_s1 = scalar_lea.hbm %s2141_s14, 1024 }
  0x4f   : > { %p1857_p11 = scmp.ne.s32.totalorder %s2141_s14, %s1856_s1  ;;  %p1858_p3 = pneg %p2145_p2 }
  0x50   : > { %s1861_s22 = scalar_lea.hbm %s2283_s0, 2048  ;;  %p1862_p12 = scmp.lt.s32.totalorder %s2141_s14, %s2283_s0 }
  0x51   : > { %p1859_p5 = pnand %p1858_p3, %p1857_p11  ;;  %p1863_p7 = scmp.lt.s32.totalorder %s1861_s22, %s1856_s1 }
  0x53   : > { %p1860_p10 = pneg %p1859_p5  ;;  %p1864_p1 = por %p1863_p7, %p1862_p12 }
  0x55   : > { %p1865_p13 = pnand %p1864_p1, %p1860_p10 }
  0x57   : > { %1868 = shalt.err (!%p1865_p13)
}
  0x58   : > { %s1869_s25 = scalar_lea.vmem %s2143_s26, 1024  ;;  %s1964_s3 = smov [#allocation2]  }
  0x59   : > { %p1870_p0 = scmp.ne.s32.totalorder %s2143_s26, %s1869_s25  ;;  %s1874_s5 = sshll.u32 %s1964_s3, 4  ;;  %s1875_s5 = int_to_ptr.vmem [resolvable:$false] %s1874_s5 }
  0x5a   : > { %s1876_s28 = scalar_lea.vmem %s1875_s5, 2048  ;;  %p1877_p5 = scmp.lt.s32.totalorder %s2143_s26, %s1875_s5 }
  0x5b   : > { %p1872_p6 = pnand %p1870_p0, %p1858_p3  ;;  %p1878_p9 = scmp.lt.s32.totalorder %s1876_s28, %s1869_s25 }
  0x5d   : > { %p1873_p11 = pneg %p1872_p6  ;;  %p1879_p4 = por %p1878_p9, %p1877_p5 }
  0x5f   : > { %p1880_p8 = pnand %p1879_p4, %p1873_p11 }
  0x61   : > { %1883 = shalt.err (!%p1880_p8)
}
  0x62   : > { %s2311_s1 = smov 4   ;;  %s2312_s29 = smov 64  }
  0x63   : > { %1657 = dma.hbm_to_vmem [thread:$0]  (!%p2145_p2), %s2141_s14, 1024, %s2143_s26, %s2149_s20, %s2312_s29, %s2312_s29, %s2311_s1  }
  0x64   : > { %p2313_p6 = scmp.ne.s32.totalorder %s2304_s17, 0 }
  0x65   : > { %s2176_s3 = sand.u32 (!%p2313_p6), 1, %s1948_s10   ;;  %p2314_p4 = scmp.ne.s32.totalorder (!%p2313_p6), %s2302_s15, 0 }
  0x66   : > { %352 = sbr.rel (%p2313_p6) target bundleno = 1004 (0x3ec), region = 56  ;;  %s1372_s5 = sshll.u32 (!%p2313_p6), %s2176_s3, 6 }
  0x67   : > { %s355_s22 = scalar_lea.sflag (!%p2313_p6), [#allocation3], %s2176_s3  ;;  %s2180_s24 = scalar_lea.vmem (!%p2313_p6), [#allocation2], %s1372_s5 }
  0x6b   : > { %1927 = dma.done.wait (%p2314_p4), %s355_s22, 1024  }
  0x6c   : > { %1929 = vsyncadd (%p2314_p4), %s355_s22, 4294966272  ;;  %p2315_p8 = scmp.eq.s32.totalorder %s2039_s13, 0 }
  0x6e   : > { %1931 = dma.done.wait (%p2315_p8), [#allocation6], 2048   ;;  %p2316_p9 = pmov %p2315_p8 }
  0x6f   : > { %p2317_p2 = pmov %p2315_p8 }
  0x70   : > { %1933 = vsyncadd (%p2316_p9), [#allocation6], 4294965248 }
  0x71   : > { %1935 = dma.done.wait (%p2317_p2), [#allocation9], 2048   ;;  %p2318_p3 = pmov %p2317_p2 }
  0x72   : > { %v1712_v0 = vld [vmem:[#allocation5 + $0x38] sm:$0xff]   ;;  %v1713_v1 = vld [vmem:[#allocation5 + $0x30] sm:$0xff]   ;;  %v1714_v2 = vld [vmem:[#allocation5 + $0x28] sm:$0xff]   ;;  %s1377_s21 = sshll.u32 %s2176_s3, 7  ;;  %s1428_s29 = sshll.u32 %s2039_s13, 11 }
  0x73   : > { %1937 = vsyncadd (%p2318_p3), [#allocation9], 4294965248  ;;  %1493 = vmatprep.subr.bf16.mxu0 %v1712_v0  ;;  %v1715_v3 = vld [vmem:[#allocation5 + $0x20] sm:$0xff]   ;;  %v1716_v5 = vld [vmem:[#allocation5 + $0x18] sm:$0xff]   ;;  %s2215_s1 = scalar_lea.vmem [#allocation11], %s1377_s21  ;;  %s2236_s15 = scalar_lea.hbm %s2292_s9, %s1428_s29 }
  0x74   : > { %1494 = vmatpush3.bf16.msra.mxu0 %v1712_v0  ;;  %v1720_v4 = vld [vmem:[%s2180_s24] sm:$0xff]   ;;  %v1717_v6 = vld [vmem:[#allocation5 + $0x10] sm:$0xff]   ;;  %v1728_v7 = vld [vmem:[#allocation7 + $0x38] sm:$0xff]   ;;  %s1250_s5 = sshll.u32 %s2215_s1, 4  ;;  %s1237_s17 = scalar_lea.sflag [#allocation4], %s2176_s3  ;;  %s2238_s5 = int_to_ptr.vmem [resolvable:$true] %s1250_s5 }
  0x75   : > { %1495 = vmatprep.subr.bf16.mxu0 %v1713_v1  ;;  %1509 = vmatprep.mubr.bf16.mxu0 %v1720_v4  ;;  %v1729_v8 = vld [vmem:[#allocation7 + $0x30] sm:$0xff]   ;;  %v1718_v9 = vld [vmem:[#allocation5 + $0x8] sm:$0xff]   ;;  %v1719_v11 = vld [vmem:[#allocation5] sm:$0xff]   ;;  %s1884_s13 = scalar_lea.vmem %s2238_s5, 2048  ;;  %p2319_p12 = scmp.ne.s32.totalorder %s2309_s19, 0 }
  0x76   : > { %1525 = vmatprep.subr.bf16.mxu1 %v1728_v7  ;;  %v1730_v10 = vld [vmem:[#allocation7 + $0x28] sm:$0xff]   ;;  %v1731_v12 = vld [vmem:[#allocation7 + $0x20] sm:$0xff]   ;;  %v1732_v13 = vld [vmem:[#allocation7 + $0x18] sm:$0xff]   ;;  %p1885_p10 = scmp.ne.s32.totalorder %s2238_s5, %s1884_s13  ;;  %s1965_s26 = smov [#allocation11]  }
  0x77   : > { %1526 = vmatpush3.bf16.msra.mxu1 %v1728_v7  ;;  %v1721_v14 = vld [vmem:[%s2180_s24 + $0x8] sm:$0xff]   ;;  %v1722_v15 = vld [vmem:[%s2180_s24 + $0x10] sm:$0xff]   ;;  %v1723_v16 = vld [vmem:[%s2180_s24 + $0x18] sm:$0xff]   ;;  %s1888_s27 = sshll.u32 %s1965_s26, 4  ;;  %s1889_s27 = int_to_ptr.vmem [resolvable:$false] %s1888_s27 }
  0x78   : > { %1496 = vmatpush3.bf16.msra.mxu0 %v1713_v1  ;;  %1527 = vmatprep.subr.bf16.mxu1 %v1729_v8  ;;  %v1724_v17 = vld [vmem:[%s2180_s24 + $0x20] sm:$0xff]   ;;  %v1725_v18 = vld [vmem:[%s2180_s24 + $0x28] sm:$0xff]   ;;  %v1726_v19 = vld [vmem:[%s2180_s24 + $0x30] sm:$0xff]   ;;  %p1886_p7 = pnand %p1885_p10, %p2319_p12  ;;  %s1890_s14 = scalar_lea.vmem %s1889_s27, 4096 }
  0x79   : > { %1497 = vmatprep.subr.bf16.mxu0 %v1714_v2  ;;  %v1727_v20 = vld [vmem:[%s2180_s24 + $0x38] sm:$0xff]   ;;  %v1733_v21 = vld [vmem:[#allocation7 + $0x10] sm:$0xff]   ;;  %v1734_v22 = vld [vmem:[#allocation7 + $0x8] sm:$0xff]   ;;  %p1891_p13 = scmp.lt.s32.totalorder %s2238_s5, %s1889_s27  ;;  %p1892_p0 = scmp.lt.s32.totalorder %s1890_s14, %s1884_s13 }
  0x7a   : > { %v1735_v23 = vld [vmem:[#allocation7] sm:$0xff]   ;;  %v1736_v24 = vld [vmem:[#allocation8 + $0x38] sm:$0xff]   ;;  %v1737_v25 = vld [vmem:[#allocation8 + $0x30] sm:$0xff]   ;;  %p1887_p1 = pneg %p1886_p7 }
  0x7b   : > { %1528 = vmatpush3.bf16.msra.mxu1 %v1729_v8  ;;  %v1738_v26 = vld [vmem:[#allocation8 + $0x28] sm:$0xff]   ;;  %v1739_v27 = vld [vmem:[#allocation8 + $0x20] sm:$0xff]   ;;  %v1740_v28 = vld [vmem:[#allocation8 + $0x18] sm:$0xff]   ;;  %p1893_p11 = por %p1892_p0, %p1891_p13 }
  0x7c   : > { %1498 = vmatpush3.bf16.msra.mxu0 %v1714_v2  ;;  %1529 = vmatprep.subr.bf16.mxu1 %v1730_v10  ;;  %v1378_v31 = vld [vmem:[%s2285_s2] ss:$0 sm:$0xff] }
  0x7d   : > { %1499 = vmatprep.subr.bf16.mxu0 %v1715_v3  ;;  %p1894_p5 = pnand %p1893_p11, %p1887_p1 }
  0x7f   : > { %1530 = vmatpush3.bf16.msra.mxu1 %v1730_v10 }
  0x80   : > { %1500 = vmatpush3.bf16.msra.mxu0 %v1715_v3  ;;  %1531 = vmatprep.subr.bf16.mxu1 %v1731_v12 }
  0x81   : > { %1501 = vmatprep.subr.bf16.mxu0 %v1716_v5 }
  0x83   : > { %1532 = vmatpush3.bf16.msra.mxu1 %v1731_v12 }
  0x84   : > { %1502 = vmatpush3.bf16.msra.mxu0 %v1716_v5  ;;  %1533 = vmatprep.subr.bf16.mxu1 %v1732_v13 }
  0x85   : > { %1503 = vmatprep.subr.bf16.mxu0 %v1717_v6 }
  0x87   : > { %1534 = vmatpush3.bf16.msra.mxu1 %v1732_v13 }
  0x88   : > { %1504 = vmatpush3.bf16.msra.mxu0 %v1717_v6  ;;  %1535 = vmatprep.subr.bf16.mxu1 %v1733_v21 }
  0x89   : > { %1505 = vmatprep.subr.bf16.mxu0 %v1718_v9 }
  0x8b   : > { %1536 = vmatpush3.bf16.msra.mxu1 %v1733_v21 }
  0x8c   : > { %1506 = vmatpush3.bf16.msra.mxu0 %v1718_v9  ;;  %1537 = vmatprep.subr.bf16.mxu1 %v1734_v22 }
  0x8d   : > { %1507 = vmatprep.subr.bf16.mxu0 %v1719_v11 }
  0x8f   : > { %1538 = vmatpush3.bf16.msra.mxu1 %v1734_v22  ;;  %v1741_v22 = vld [vmem:[#allocation8 + $0x10] sm:$0xff]  }
  0x90   : > { %1508 = vmatpush3.bf16.msra.mxu0 %v1719_v11  ;;  %1539 = vmatprep.subr.bf16.mxu1 %v1735_v23 }
  0x91   : > { %1557 = vmatprep.subr.bf16.mxu0 %v1736_v24 }
  0x93   : > { %1510 = vmatmul.mubr.bf16.vlgmr.msra.gmra.mxu0 %v1721_v14  ;;  %1540 = vmatpush3.bf16.msra.mxu1 %v1735_v23  ;;  %v1742_v23 = vld [vmem:[#allocation8 + $0x8] sm:$0xff]  }
  0x94   : > { %1513 = vmatprep.mubr.bf16.mxu0 %v1722_v15  ;;  %1558 = vmatpush3.bf16.msra.mxu0 %v1736_v24  ;;  %v1743_v24 = vld [vmem:[#allocation8] sm:$0xff]  }
  0x95   : > { %1559 = vmatprep.subr.bf16.mxu0 %v1737_v25 }
  0x98   : > { %1560 = vmatpush3.bf16.msra.mxu0 %v1737_v25  ;;  %v1744_v25 = vld [vmem:[#allocation10 + $0x38] sm:$0xff]  }
  0x99   : > { %1561 = vmatprep.subr.bf16.mxu0 %v1738_v26  ;;  %1589 = vmatprep.subr.bf16.mxu1 %v1744_v25 }
  0x9b   : > { %1514 = vmatmul.mubr.bf16.gmra.mxu0 %v1723_v16 }
  0x9c   : > { %1517 = vmatprep.mubr.bf16.mxu0 %v1724_v17  ;;  %1562 = vmatpush3.bf16.msra.mxu0 %v1738_v26  ;;  %v1745_v26 = vld [vmem:[#allocation10 + $0x30] sm:$0xff]  }
  0x9d   : > { %1563 = vmatprep.subr.bf16.mxu0 %v1739_v27 }
  0xa0   : > { %1564 = vmatpush3.bf16.msra.mxu0 %v1739_v27  ;;  %v1746_v27 = vld [vmem:[#allocation10 + $0x28] sm:$0xff]  }
  0xa1   : > { %1565 = vmatprep.subr.bf16.mxu0 %v1740_v28 }
  0xa3   : > { %1518 = vmatmul.mubr.bf16.gmra.mxu0 %v1725_v18 }
  0xa4   : > { %1521 = vmatprep.mubr.bf16.mxu0 %v1726_v19  ;;  %1566 = vmatpush3.bf16.msra.mxu0 %v1740_v28  ;;  %v1747_v28 = vld [vmem:[#allocation10 + $0x20] sm:$0xff]  }
  0xa5   : > { %1567 = vmatprep.subr.bf16.mxu0 %v1741_v22 }
  0xa8   : > { %1568 = vmatpush3.bf16.msra.mxu0 %v1741_v22 }
  0xa9   : > { %1569 = vmatprep.subr.bf16.mxu0 %v1742_v23 }
  0xab   : > { %1522 = vmatmul.mubr.bf16.gmra.mxu0 %v1727_v20 }
  0xac   : > { %1570 = vmatpush3.bf16.msra.mxu0 %v1742_v23  ;;  %v1749_v23 = vld [vmem:[#allocation10 + $0x10] sm:$0xff]  }
  0xad   : > { %1571 = vmatprep.subr.bf16.mxu0 %v1743_v24 }
  0xb0   : > { %1572 = vmatpush3.bf16.msra.mxu0 %v1743_v24  ;;  %v1750_v24 = vld [vmem:[#allocation10 + $0x8] sm:$0xff]  }
 0x153   : > { %v1511_v29 = vpop.f32.mrf.mxu0 }
 0x154   : > { %v590_v35 = vadd.f32 %v1511_v29, %v1378_v31  ;;  %v1748_v29 = vld [vmem:[#allocation10 + $0x18] sm:$0xff]  }
 0x155   : > { %v581_v30 = vpop.f32.mrf.mxu0 }
 0x156   : > { %v582_v33 = vadd.f32 %v1378_v31, %v581_v30  ;;  %v646_v42 = vmax.f32 %v590_v35, 0.0 }
 0x157   : > { %v1512_v32 = vpop.f32.mrf.mxu0 }
 0x158   : > { %v593_v34 = vadd.f32 %v1512_v32, %v1378_v31  ;;  %v644_v40 = vmax.f32 %v582_v33, 0.0  ;;  %v1395_v32 = vld [vmem:[%s2287_s4] ss:$0 sm:$0xff] }
 0x159   : > { %v584_v36 = vpop.f32.mrf.mxu0 }
 0x15a   : > { %v585_v37 = vadd.f32 %v1378_v31, %v584_v36  ;;  %v647_v38 = vmax.f32 %v593_v34, 0.0 }
 0x15b   : > { %v1515_v39 = vpop.f32.mrf.mxu0 }
 0x15c   : > { %v645_v41 = vmax.f32 %v585_v37, 0.0  ;;  %v661_v45 = vpack.c.bf16 %v647_v38, %v646_v42  ;;  %v606_v49 = vadd.f32 %v1515_v39, %v1378_v31 }
 0x15d   : > { %v597_v43 = vpop.f32.mrf.mxu0 }
 0x15e   : > { %v660_v44 = vpack.c.bf16 %v645_v41, %v644_v40  ;;  %v598_v47 = vadd.f32 %v1378_v31, %v597_v43  ;;  %v650_v56 = vmax.f32 %v606_v49, 0.0 }
 0x15f   : > { %v1516_v46 = vpop.f32.mrf.mxu0 }
 0x160   : > { %v609_v48 = vadd.f32 %v1516_v46, %v1378_v31  ;;  %1541 = vmatprep.mubr.bf16.mxu1 %v660_v44  ;;  %v648_v54 = vmax.f32 %v598_v47, 0.0 }
 0x161   : > { %v600_v50 = vpop.f32.mrf.mxu0  ;;  %1542 = vmatmul.mubr.bf16.vlgmr.msra.gmra.mxu1 %v661_v45 }
 0x162   : > { %v601_v51 = vadd.f32 %v1378_v31, %v600_v50  ;;  %v651_v52 = vmax.f32 %v609_v48, 0.0  ;;  %1590 = vmatpush3.bf16.msra.mxu1 %v1744_v25  ;;  %v1751_v25 = vld [vmem:[#allocation10] sm:$0xff]  }
 0x163   : > { %v1519_v53 = vpop.f32.mrf.mxu0  ;;  %1591 = vmatprep.subr.bf16.mxu1 %v1745_v26 }
 0x164   : > { %v649_v55 = vmax.f32 %v601_v51, 0.0  ;;  %v663_v59 = vpack.c.bf16 %v651_v52, %v650_v56  ;;  %v622_v63 = vadd.f32 %v1519_v53, %v1378_v31 }
 0x165   : > { %v613_v57 = vpop.f32.mrf.mxu0 }
 0x166   : > { %v662_v58 = vpack.c.bf16 %v649_v55, %v648_v54  ;;  %v614_v61 = vadd.f32 %v1378_v31, %v613_v57  ;;  %v654_v6 = vmax.f32 %v622_v63, 0.0  ;;  %1592 = vmatpush3.bf16.msra.mxu1 %v1745_v26 }
 0x167   : > { %v1520_v60 = vpop.f32.mrf.mxu0  ;;  %1593 = vmatprep.subr.bf16.mxu1 %v1746_v27 }
 0x168   : > { %v625_v62 = vadd.f32 %v1520_v60, %v1378_v31  ;;  %1545 = vmatprep.mubr.bf16.mxu1 %v662_v58  ;;  %v652_v4 = vmax.f32 %v614_v61, 0.0 }
 0x169   : > { %v616_v0 = vpop.f32.mrf.mxu0  ;;  %1546 = vmatmul.mubr.bf16.gmra.mxu1 %v663_v59 }
 0x16a   : > { %v617_v1 = vadd.f32 %v1378_v31, %v616_v0  ;;  %v655_v2 = vmax.f32 %v625_v62, 0.0  ;;  %1594 = vmatpush3.bf16.msra.mxu1 %v1746_v27 }
 0x16b   : > { %v1523_v3 = vpop.f32.mrf.mxu0  ;;  %1595 = vmatprep.subr.bf16.mxu1 %v1747_v28 }
 0x16c   : > { %v653_v5 = vmax.f32 %v617_v1, 0.0  ;;  %v665_v9 = vpack.c.bf16 %v655_v2, %v654_v6  ;;  %v638_v13 = vadd.f32 %v1523_v3, %v1378_v31 }
 0x16d   : > { %v629_v7 = vpop.f32.mrf.mxu0 }
 0x16e   : > { %v664_v8 = vpack.c.bf16 %v653_v5, %v652_v4  ;;  %v630_v11 = vadd.f32 %v1378_v31, %v629_v7  ;;  %v658_v19 = vmax.f32 %v638_v13, 0.0  ;;  %1596 = vmatpush3.bf16.msra.mxu1 %v1747_v28  ;;  %v1404_v28 = vld [vmem:[%s2289_s6] ss:$0 sm:$0xff] }
 0x16f   : > { %v1524_v10 = vpop.f32.mrf.mxu0  ;;  %1597 = vmatprep.subr.bf16.mxu1 %v1748_v29 }
 0x170   : > { %v641_v12 = vadd.f32 %v1524_v10, %v1378_v31  ;;  %1549 = vmatprep.mubr.bf16.mxu1 %v664_v8  ;;  %v656_v17 = vmax.f32 %v630_v11, 0.0 }
 0x171   : > { %v632_v14 = vpop.f32.mrf.mxu0  ;;  %1550 = vmatmul.mubr.bf16.gmra.mxu1 %v665_v9 }
 0x172   : > { %v633_v15 = vadd.f32 %v1378_v31, %v632_v14  ;;  %v659_v16 = vmax.f32 %v641_v12, 0.0  ;;  %1598 = vmatpush3.bf16.msra.mxu1 %v1748_v29 }
 0x173   : > { %1599 = vmatprep.subr.bf16.mxu1 %v1749_v23 }
 0x174   : > { %v657_v18 = vmax.f32 %v633_v15, 0.0  ;;  %v667_v21 = vpack.c.bf16 %v659_v16, %v658_v19 }
 0x176   : > { %v666_v20 = vpack.c.bf16 %v657_v18, %v656_v17  ;;  %1600 = vmatpush3.bf16.msra.mxu1 %v1749_v23 }
 0x177   : > { %1601 = vmatprep.subr.bf16.mxu1 %v1750_v24 }
 0x178   : > { %1553 = vmatprep.mubr.bf16.mxu1 %v666_v20 }
 0x179   : > { %1554 = vmatmul.mubr.bf16.gmra.mxu1 %v667_v21 }
 0x17a   : > { %1602 = vmatpush3.bf16.msra.mxu1 %v1750_v24 }
 0x17b   : > { %1603 = vmatprep.subr.bf16.mxu1 %v1751_v25 }
 0x17e   : > { %1604 = vmatpush3.bf16.msra.mxu1 %v1751_v25 }
 0x221   : > { %v1543_v30 = vpop.f32.mrf.mxu1 }
 0x222   : > { %v782_v36 = vadd.f32 %v1543_v30, %v1395_v32 }
 0x223   : > { %v773_v31 = vpop.f32.mrf.mxu1 }
 0x224   : > { %v774_v34 = vadd.f32 %v1395_v32, %v773_v31  ;;  %v838_v43 = vmax.f32 %v782_v36, 0.0 }
 0x225   : > { %v1544_v33 = vpop.f32.mrf.mxu1 }
 0x226   : > { %v785_v35 = vadd.f32 %v1544_v33, %v1395_v32  ;;  %v836_v41 = vmax.f32 %v774_v34, 0.0 }
 0x227   : > { %v776_v37 = vpop.f32.mrf.mxu1 }
 0x228   : > { %v777_v38 = vadd.f32 %v1395_v32, %v776_v37  ;;  %v839_v39 = vmax.f32 %v785_v35, 0.0 }
 0x229   : > { %v1547_v40 = vpop.f32.mrf.mxu1 }
 0x22a   : > { %v837_v42 = vmax.f32 %v777_v38, 0.0  ;;  %v853_v46 = vpack.c.bf16 %v839_v39, %v838_v43  ;;  %v798_v50 = vadd.f32 %v1547_v40, %v1395_v32 }
 0x22b   : > { %v789_v44 = vpop.f32.mrf.mxu1 }
 0x22c   : > { %v852_v45 = vpack.c.bf16 %v837_v42, %v836_v41  ;;  %v790_v48 = vadd.f32 %v1395_v32, %v789_v44  ;;  %v842_v57 = vmax.f32 %v798_v50, 0.0 }
 0x22d   : > { %v1548_v47 = vpop.f32.mrf.mxu1 }
 0x22e   : > { %v801_v49 = vadd.f32 %v1548_v47, %v1395_v32  ;;  %1573 = vmatprep.mubr.bf16.mxu0 %v852_v45  ;;  %v840_v55 = vmax.f32 %v790_v48, 0.0 }
 0x22f   : > { %v792_v51 = vpop.f32.mrf.mxu1  ;;  %1574 = vmatmul.mubr.bf16.vlgmr.msra.gmra.mxu0 %v853_v46 }
 0x230   : > { %v793_v52 = vadd.f32 %v1395_v32, %v792_v51  ;;  %v843_v53 = vmax.f32 %v801_v49, 0.0 }
 0x231   : > { %v1551_v54 = vpop.f32.mrf.mxu1 }
 0x232   : > { %v841_v56 = vmax.f32 %v793_v52, 0.0  ;;  %v855_v60 = vpack.c.bf16 %v843_v53, %v842_v57  ;;  %v814_v0 = vadd.f32 %v1551_v54, %v1395_v32 }
 0x233   : > { %v805_v58 = vpop.f32.mrf.mxu1 }
 0x234   : > { %v854_v59 = vpack.c.bf16 %v841_v56, %v840_v55  ;;  %v806_v62 = vadd.f32 %v1395_v32, %v805_v58  ;;  %v846_v7 = vmax.f32 %v814_v0, 0.0 }
 0x235   : > { %v1552_v61 = vpop.f32.mrf.mxu1 }
 0x236   : > { %v817_v63 = vadd.f32 %v1552_v61, %v1395_v32  ;;  %1577 = vmatprep.mubr.bf16.mxu0 %v854_v59  ;;  %v844_v5 = vmax.f32 %v806_v62, 0.0 }
 0x237   : > { %v808_v1 = vpop.f32.mrf.mxu1  ;;  %1578 = vmatmul.mubr.bf16.gmra.mxu0 %v855_v60 }
 0x238   : > { %v809_v2 = vadd.f32 %v1395_v32, %v808_v1  ;;  %v847_v3 = vmax.f32 %v817_v63, 0.0 }
 0x239   : > { %v1555_v4 = vpop.f32.mrf.mxu1 }
 0x23a   : > { %v845_v6 = vmax.f32 %v809_v2, 0.0  ;;  %v857_v10 = vpack.c.bf16 %v847_v3, %v846_v7  ;;  %v830_v14 = vadd.f32 %v1555_v4, %v1395_v32 }
 0x23b   : > { %v821_v8 = vpop.f32.mrf.mxu1 }
 0x23c   : > { %v856_v9 = vpack.c.bf16 %v845_v6, %v844_v5  ;;  %v822_v12 = vadd.f32 %v1395_v32, %v821_v8  ;;  %v850_v20 = vmax.f32 %v830_v14, 0.0 }
 0x23d   : > { %v1556_v11 = vpop.f32.mrf.mxu1 }
 0x23e   : > { %v833_v13 = vadd.f32 %v1556_v11, %v1395_v32  ;;  %1581 = vmatprep.mubr.bf16.mxu0 %v856_v9  ;;  %v848_v18 = vmax.f32 %v822_v12, 0.0 }
 0x23f   : > { %v824_v15 = vpop.f32.mrf.mxu1  ;;  %1582 = vmatmul.mubr.bf16.gmra.mxu0 %v857_v10 }
 0x240   : > { %v825_v16 = vadd.f32 %v1395_v32, %v824_v15  ;;  %v851_v17 = vmax.f32 %v833_v13, 0.0 }
 0x242   : > { %v849_v19 = vmax.f32 %v825_v16, 0.0  ;;  %v859_v22 = vpack.c.bf16 %v851_v17, %v850_v20 }
 0x244   : > { %v858_v21 = vpack.c.bf16 %v849_v19, %v848_v18  ;;  %v1413_v19 = vld [vmem:[%s2291_s8] ss:$0 sm:$0xff] }
 0x246   : > { %1585 = vmatprep.mubr.bf16.mxu0 %v858_v21 }
 0x247   : > { %1586 = vmatmul.mubr.bf16.gmra.mxu0 %v859_v22 }
 0x2ef   : > { %v1575_v26 = vpop.f32.mrf.mxu0 }
 0x2f0   : > { %v974_v32 = vadd.f32 %v1575_v26, %v1404_v28 }
 0x2f1   : > { %v965_v27 = vpop.f32.mrf.mxu0 }
 0x2f2   : > { %v966_v30 = vadd.f32 %v1404_v28, %v965_v27  ;;  %v1030_v39 = vmax.f32 %v974_v32, 0.0 }
 0x2f3   : > { %v1576_v29 = vpop.f32.mrf.mxu0 }
 0x2f4   : > { %v977_v31 = vadd.f32 %v1576_v29, %v1404_v28  ;;  %v1028_v37 = vmax.f32 %v966_v30, 0.0 }
 0x2f5   : > { %v968_v33 = vpop.f32.mrf.mxu0 }
 0x2f6   : > { %v969_v34 = vadd.f32 %v1404_v28, %v968_v33  ;;  %v1031_v35 = vmax.f32 %v977_v31, 0.0 }
 0x2f7   : > { %v1579_v36 = vpop.f32.mrf.mxu0 }
 0x2f8   : > { %v1029_v38 = vmax.f32 %v969_v34, 0.0  ;;  %v1045_v42 = vpack.c.bf16 %v1031_v35, %v1030_v39  ;;  %v990_v46 = vadd.f32 %v1579_v36, %v1404_v28 }
 0x2f9   : > { %v981_v40 = vpop.f32.mrf.mxu0 }
 0x2fa   : > { %v1044_v41 = vpack.c.bf16 %v1029_v38, %v1028_v37  ;;  %v982_v44 = vadd.f32 %v1404_v28, %v981_v40  ;;  %v1034_v53 = vmax.f32 %v990_v46, 0.0 }
 0x2fb   : > { %v1580_v43 = vpop.f32.mrf.mxu0 }
 0x2fc   : > { %v993_v45 = vadd.f32 %v1580_v43, %v1404_v28  ;;  %1605 = vmatprep.mubr.bf16.mxu1 %v1044_v41  ;;  %v1032_v51 = vmax.f32 %v982_v44, 0.0 }
 0x2fd   : > { %v984_v47 = vpop.f32.mrf.mxu0  ;;  %1606 = vmatmul.mubr.bf16.vlgmr.msra.gmra.mxu1 %v1045_v42 }
 0x2fe   : > { %v985_v48 = vadd.f32 %v1404_v28, %v984_v47  ;;  %v1035_v49 = vmax.f32 %v993_v45, 0.0 }
 0x2ff   : > { %v1583_v50 = vpop.f32.mrf.mxu0 }
 0x300   : > { %v1033_v52 = vmax.f32 %v985_v48, 0.0  ;;  %v1047_v56 = vpack.c.bf16 %v1035_v49, %v1034_v53  ;;  %v1006_v60 = vadd.f32 %v1583_v50, %v1404_v28 }
 0x301   : > { %v997_v54 = vpop.f32.mrf.mxu0 }
 0x302   : > { %v1046_v55 = vpack.c.bf16 %v1033_v52, %v1032_v51  ;;  %v998_v58 = vadd.f32 %v1404_v28, %v997_v54  ;;  %v1038_v3 = vmax.f32 %v1006_v60, 0.0 }
 0x303   : > { %v1584_v57 = vpop.f32.mrf.mxu0 }
 0x304   : > { %v1009_v59 = vadd.f32 %v1584_v57, %v1404_v28  ;;  %1609 = vmatprep.mubr.bf16.mxu1 %v1046_v55  ;;  %v1036_v1 = vmax.f32 %v998_v58, 0.0 }
 0x305   : > { %v1000_v61 = vpop.f32.mrf.mxu0  ;;  %1610 = vmatmul.mubr.bf16.gmra.mxu1 %v1047_v56 }
 0x306   : > { %v1001_v62 = vadd.f32 %v1404_v28, %v1000_v61  ;;  %v1039_v63 = vmax.f32 %v1009_v59, 0.0 }
 0x307   : > { %v1587_v0 = vpop.f32.mrf.mxu0 }
 0x308   : > { %v1037_v2 = vmax.f32 %v1001_v62, 0.0  ;;  %v1049_v6 = vpack.c.bf16 %v1039_v63, %v1038_v3  ;;  %v1022_v10 = vadd.f32 %v1587_v0, %v1404_v28 }
 0x309   : > { %v1013_v4 = vpop.f32.mrf.mxu0 }
 0x30a   : > { %v1048_v5 = vpack.c.bf16 %v1037_v2, %v1036_v1  ;;  %v1014_v8 = vadd.f32 %v1404_v28, %v1013_v4  ;;  %v1042_v16 = vmax.f32 %v1022_v10, 0.0 }
 0x30b   : > { %v1588_v7 = vpop.f32.mrf.mxu0 }
 0x30c   : > { %v1025_v9 = vadd.f32 %v1588_v7, %v1404_v28  ;;  %1613 = vmatprep.mubr.bf16.mxu1 %v1048_v5  ;;  %v1040_v14 = vmax.f32 %v1014_v8, 0.0 }
 0x30d   : > { %v1016_v11 = vpop.f32.mrf.mxu0  ;;  %1614 = vmatmul.mubr.bf16.gmra.mxu1 %v1049_v6 }
 0x30e   : > { %v1017_v12 = vadd.f32 %v1404_v28, %v1016_v11  ;;  %v1043_v13 = vmax.f32 %v1025_v9, 0.0 }
 0x310   : > { %v1041_v15 = vmax.f32 %v1017_v12, 0.0  ;;  %v1051_v18 = vpack.c.bf16 %v1043_v13, %v1042_v16 }
 0x312   : > { %v1050_v17 = vpack.c.bf16 %v1041_v15, %v1040_v14 }
 0x314   : > { %1617 = vmatprep.mubr.bf16.mxu1 %v1050_v17 }
 0x315   : > { %1618 = vmatmul.mubr.bf16.gmra.mxu1 %v1051_v18 }
 0x3bd   : > { %v1607_v20 = vpop.f32.mrf.mxu1 }
 0x3be   : > { %v1166_v21 = vadd.f32 %v1607_v20, %v1413_v19 }
 0x3bf   : > { %v1157_v22 = vpop.f32.mrf.mxu1 }
 0x3c0   : > { %1222 = vst [vmem:[%s2215_s1 + $0x10] sm:$0xff] %v1166_v21  ;;  %v1158_v23 = vadd.f32 %v1413_v19, %v1157_v22 }
 0x3c1   : > { %v1608_v24 = vpop.f32.mrf.mxu1 }
 0x3c2   : > { %1220 = vst [vmem:[%s2215_s1] sm:$0xff] %v1158_v23  ;;  %v1169_v25 = vadd.f32 %v1608_v24, %v1413_v19 }
 0x3c3   : > { %v1160_v26 = vpop.f32.mrf.mxu1 }
 0x3c4   : > { %1223 = vst [vmem:[%s2215_s1 + $0x18] sm:$0xff] %v1169_v25  ;;  %v1161_v27 = vadd.f32 %v1413_v19, %v1160_v26 }
 0x3c5   : > { %v1611_v28 = vpop.f32.mrf.mxu1 }
 0x3c6   : > { %1221 = vst [vmem:[%s2215_s1 + $0x8] sm:$0xff] %v1161_v27  ;;  %v1182_v29 = vadd.f32 %v1611_v28, %v1413_v19 }
 0x3c7   : > { %v1173_v30 = vpop.f32.mrf.mxu1 }
 0x3c8   : > { %1226 = vst [vmem:[%s2215_s1 + $0x30] sm:$0xff] %v1182_v29  ;;  %v1174_v31 = vadd.f32 %v1413_v19, %v1173_v30 }
 0x3c9   : > { %v1612_v32 = vpop.f32.mrf.mxu1 }
 0x3ca   : > { %1224 = vst [vmem:[%s2215_s1 + $0x20] sm:$0xff] %v1174_v31  ;;  %v1185_v33 = vadd.f32 %v1612_v32, %v1413_v19 }
 0x3cb   : > { %v1176_v34 = vpop.f32.mrf.mxu1 }
 0x3cc   : > { %1227 = vst [vmem:[%s2215_s1 + $0x38] sm:$0xff] %v1185_v33  ;;  %v1177_v35 = vadd.f32 %v1413_v19, %v1176_v34 }
 0x3cd   : > { %v1615_v36 = vpop.f32.mrf.mxu1 }
 0x3ce   : > { %1225 = vst [vmem:[%s2215_s1 + $0x28] sm:$0xff] %v1177_v35  ;;  %v1198_v37 = vadd.f32 %v1615_v36, %v1413_v19 }
 0x3cf   : > { %v1189_v38 = vpop.f32.mrf.mxu1 }
 0x3d0   : > { %1230 = vst [vmem:[%s2215_s1 + $0x50] sm:$0xff] %v1198_v37  ;;  %v1190_v39 = vadd.f32 %v1413_v19, %v1189_v38 }
 0x3d1   : > { %v1616_v40 = vpop.f32.mrf.mxu1 }
 0x3d2   : > { %1228 = vst [vmem:[%s2215_s1 + $0x40] sm:$0xff] %v1190_v39  ;;  %v1201_v41 = vadd.f32 %v1616_v40, %v1413_v19 }
 0x3d3   : > { %v1192_v42 = vpop.f32.mrf.mxu1 }
 0x3d4   : > { %1231 = vst [vmem:[%s2215_s1 + $0x58] sm:$0xff] %v1201_v41  ;;  %v1193_v43 = vadd.f32 %v1413_v19, %v1192_v42 }
 0x3d5   : > { %v1619_v44 = vpop.f32.mrf.mxu1 }
 0x3d6   : > { %1229 = vst [vmem:[%s2215_s1 + $0x48] sm:$0xff] %v1193_v43  ;;  %v1214_v45 = vadd.f32 %v1619_v44, %v1413_v19 }
 0x3d7   : > { %v1205_v46 = vpop.f32.mrf.mxu1 }
 0x3d8   : > { %1234 = vst [vmem:[%s2215_s1 + $0x70] sm:$0xff] %v1214_v45  ;;  %v1206_v47 = vadd.f32 %v1413_v19, %v1205_v46 }
 0x3d9   : > { %v1620_v48 = vpop.f32.mrf.mxu1 }
 0x3da   : > { %1232 = vst [vmem:[%s2215_s1 + $0x60] sm:$0xff] %v1206_v47  ;;  %v1217_v49 = vadd.f32 %v1620_v48, %v1413_v19 }
 0x3db   : > { %v1208_v50 = vpop.f32.mrf.mxu1 }
 0x3dc   : > { %1235 = vst [vmem:[%s2215_s1 + $0x78] sm:$0xff] %v1217_v49  ;;  %v1209_v51 = vadd.f32 %v1413_v19, %v1208_v50 }
 0x3de   : > { %1233 = vst [vmem:[%s2215_s1 + $0x68] sm:$0xff] %v1209_v51 }
 0x3df   : > { %1897 = shalt.err (!%p1894_p5)
}
 0x3e0   : > { %s1898_s20 = scalar_lea.hbm %s2236_s15, 2048  ;;  %s1902_s28 = scalar_lea.hbm %s2292_s9, 4096 }
 0x3e1   : > { %p1899_p6 = scmp.ne.s32.totalorder %s2236_s15, %s1898_s20  ;;  %p1903_p9 = scmp.lt.s32.totalorder %s2236_s15, %s2292_s9 }
 0x3e2   : > { %p1904_p2 = scmp.lt.s32.totalorder %s1902_s28, %s1898_s20 }
 0x3e3   : > { %p1900_p4 = pnand %p1899_p6, %p2319_p12 }
 0x3e4   : > { %p1905_p3 = por %p1904_p2, %p1903_p9 }
 0x3e5   : > { %p1901_p8 = pneg %p1900_p4 }
 0x3e7   : > { %p1906_p10 = pnand %p1905_p3, %p1901_p8 }
 0x3e9   : > { %1909 = shalt.err (!%p1906_p10)
}
 0x3ea   : > { %s1966_s22 = smov 128   ;;  %s1967_s24 = smov 8  }
 0x3eb   : > { %1639 = dma.vmem_to_hbm [thread:$0]  (%p2319_p12), %s2238_s5, 2048, %s2236_s15, %s1237_s17, %s1966_s22, %s1966_s22, %s1967_s24  }
 0x3ec PF: > { %s1265_s13 = sand.u32 1, %s1944_s30   ;;  %p2320_p7 = scmp.ne.s32.totalorder %s2303_s16, 0 }
 0x3ed   : > { %p2321_p1 = scmp.ge.s32.totalorder %s1956_s12, 2  ;;  %s1266_s26 = scalar_lea.sflag [#allocation4], %s1265_s13 }
 0x3ef   : > { %p1659_p13 = pnand %p2321_p1, %p2320_p7 }
 0x3f1   : > { %p1660_p0 = pneg %p1659_p13 }
 0x3f3   : > { %1939 = dma.done.wait (%p1660_p0), %s1266_s26, 2048  }
 0x3f4   : > { %1941 = vsyncadd (%p1660_p0), %s1266_s26, 4294965248  ;;  %p24_p11 = scmp.ge.s32.totalorder %s2118_s18, 4   ;;  %s2322_s30 = smov %s1948_s10 }
 0x3f5   : > { %s2323_s10 = smov %s1952_s11  ;;  %s2324_s11 = smov %s2134_s23 }
 0x3f6   : > { %s2325_s12 = smov %s2118_s18  ;;  %26 = sbr.rel (!%p24_p11) target bundleno = 11 (0xb), region = 117 }
 0x3fb   :  { %1271 = vsyncpa [#allocation3], 1 }
 0x3fc   :  { %1273 = vsyncpa [#allocation3 + $0x1], 1 }
 0x3fd   :  { %1274 = vsyncpa [#allocation6], 1 }
 0x3fe   :  { %1275 = vsyncpa [#allocation9], 1 }
 0x3ff   :  { %1276 = vsyncpa [#allocation4], 1 }
 0x400   :  { %1278 = vsyncpa [#allocation4 + $0x1], 1 }

</bundles_post_ra>
